<compile_context>
chip_gen: v7x
topology: tpu7x:2x2x1
jax: 0.10.0
libtpu: 0.0.40
codegen_flags: <defaults>
</compile_context>

<pallas_src>
import functools
import math

import jax
import jax.numpy as jnp
from jax.experimental import pallas as pl
from jax.experimental.pallas import tpu as pltpu


def _round_up(x, m):
    return (x + m - 1) // m * m


def _mlp_q_kernel(x_ref, w1_ref, b1_ref, w2_ref, b2_ref, w3_ref, b3_ref, o_ref):
    # Transposed compute: batch on lanes. All dots accumulate in f32 on the MXU.
    cdt = w1_ref.dtype  # compute dtype (f32 or bf16)
    # hidden layer 1: Linear + ReLU   (h1, obs_dim) @ (obs_dim, tile)
    h = jnp.dot(w1_ref[...], x_ref[...], preferred_element_type=jnp.float32)
    h = jnp.maximum(h + b1_ref[...], 0.0)
    # hidden layer 2: Linear + ReLU   (h2, h1) @ (h1, tile)
    h = jnp.dot(w2_ref[...], h.astype(cdt), preferred_element_type=jnp.float32)
    h = jnp.maximum(h + b2_ref[...], 0.0)
    # output layer: Linear (Identity) (act_dim, h2) @ (h2, tile)
    q = jnp.dot(w3_ref[...], h.astype(cdt), preferred_element_type=jnp.float32)
    q = q + b3_ref[...]
    o_ref[...] = q.astype(o_ref.dtype)


@functools.partial(jax.jit, static_argnames=("batch_tile", "compute_dtype"))
def mlp_q_forward(obs, params, *, batch_tile=512, compute_dtype=jnp.float32):
    """Fused forward pass of MLPQFunction.q; squeeze(-1) applied in wrapper.

    params: (w1, b1, w2, b2, w3, b3) with PyTorch nn.Linear layout:
            w_i is (out_dim, in_dim), b_i is (out_dim, 1) float32.
    """
    w1, b1, w2, b2, w3, b3 = params
    B, obs_dim = obs.shape
    h1 = w1.shape[0]
    h2 = w2.shape[0]
    act_dim = w3.shape[0]
    out_dtype = obs.dtype

    # Tile selection: lane-multiple (>=128), capped at batch_tile. Keeps the
    # grid length >= 2 for large B so v7x can shard across both TensorCores.
    tile = min(batch_tile, _round_up(B, 128))
    tile = _round_up(tile, 128)
    b_pad = _round_up(B, tile)
    grid = (b_pad // tile,)

    # Transpose to batch-on-lanes, cast matmul operands to compute dtype, and
    # zero-pad ragged batches up to a tile multiple (sliced off afterwards).
    x_t = obs.T.astype(compute_dtype)
    if b_pad != B:
        x_t = jnp.pad(x_t, ((0, 0), (0, b_pad - B)))
    w1c = w1.astype(compute_dtype)
    w2c = w2.astype(compute_dtype)
    w3c = w3.astype(compute_dtype)
    b1f = b1.astype(jnp.float32)
    b2f = b2.astype(jnp.float32)
    b3f = b3.astype(jnp.float32)

    # Advisory cost estimate so XLA can overlap this tiny call with neighbors.
    flops = 2 * b_pad * (obs_dim * h1 + h1 * h2 + h2 * act_dim)
    in_bytes = (x_t.size * x_t.dtype.itemsize
                + sum(w.size * w.dtype.itemsize for w in (w1c, w2c, w3c))
                + sum(b.size * b.dtype.itemsize for b in (b1f, b2f, b3f)))
    out_bytes = b_pad * act_dim * jnp.dtype(out_dtype).itemsize
    cost = pl.CostEstimate(flops=flops, transcendentals=0,
                           bytes_accessed=in_bytes + out_bytes)

    def rep(i):  # weights/biases: constant block index -> resident in VMEM
        return (0, 0)

    q_t = pl.pallas_call(
        _mlp_q_kernel,
        out_shape=jax.ShapeDtypeStruct((act_dim, b_pad), out_dtype),
        grid_spec=pl.GridSpec(
            grid=grid,
            in_specs=[
                pl.BlockSpec((obs_dim, tile), lambda i: (0, i)),  # x^T tile
                pl.BlockSpec((h1, obs_dim), rep),
                pl.BlockSpec((h1, 1), rep),
                pl.BlockSpec((h2, h1), rep),
                pl.BlockSpec((h2, 1), rep),
                pl.BlockSpec((act_dim, h2), rep),
                pl.BlockSpec((act_dim, 1), rep),
            ],
            out_specs=pl.BlockSpec((act_dim, tile), lambda i: (0, i)),
        ),
        compiler_params=pltpu.CompilerParams(
            dimension_semantics=("parallel",)),
        cost_estimate=cost,
    )(x_t, w1c, b1f, w2c, b2f, w3c, b3f)

    # Back to (B, act_dim); drop batch padding.
    q = q_t[:, :B].T
    # torch.squeeze(q, -1): only removes the last dim if it has size 1.
    if q.shape[-1] == 1:
        q = jnp.squeeze(q, -1)
    return q


def init_params(key, sizes):
    """Deterministic init mimicking nn.Linear default (U[-1/sqrt(fan_in), +]).

    Weights stored in PyTorch layout (out_dim, in_dim); biases as (out_dim, 1).
    """
    params = []
    for j in range(len(sizes) - 1):
        fan_in, fan_out = sizes[j], sizes[j + 1]
        key, kw, kb = jax.random.split(key, 3)
        bound = 1.0 / math.sqrt(fan_in)
        w = jax.random.uniform(kw, (fan_out, fan_in), jnp.float32, -bound, bound)
        b = jax.random.uniform(kb, (fan_out, 1), jnp.float32, -bound, bound)
        params += [w, b]
    return tuple(params)


def reference_forward(obs, params):
    w1, b1, w2, b2, w3, b3 = params
    h = jnp.maximum(obs @ w1.T + b1.T, 0.0)
    h = jnp.maximum(h @ w2.T + b2.T, 0.0)
    q = h @ w3.T + b3.T
    if q.shape[-1] == 1:
        q = jnp.squeeze(q, -1)
    return q


if __name__ == "__main__":
    key = jax.random.PRNGKey(0)

    # MLPQFunction(obs_dim=16, act_dim=4, hidden_sizes=(32, 32), activation=nn.ReLU)
    obs_dim, act_dim = 16, 4
    hidden_sizes = (32, 32)
    params = init_params(jax.random.PRNGKey(1),
                         [obs_dim] + list(hidden_sizes) + [act_dim])

    # Small batch (f32 path, strict check).
    batch = 8
    key, kobs = jax.random.split(key)
    obs = jax.random.normal(kobs, (batch, obs_dim), jnp.float32)
    q = jax.block_until_ready(mlp_q_forward(obs, params))
    q_ref = reference_forward(obs, params)
    assert q.shape == (batch, act_dim), q.shape
    assert jnp.allclose(q, q_ref, atol=1e-5, rtol=1e-5), "f32 mismatch vs reference"

    # Ragged batch (not a multiple of the tile) exercises the pad/slice path.
    batch2 = 300
    key, kobs2 = jax.random.split(key)
    obs2 = jax.random.normal(kobs2, (batch2, obs_dim), jnp.float32)
    q2 = jax.block_until_ready(mlp_q_forward(obs2, params))
    q2_ref = reference_forward(obs2, params)
    assert q2.shape == (batch2, act_dim), q2.shape
    assert jnp.allclose(q2, q2_ref, atol=1e-5, rtol=1e-5), "ragged-batch mismatch"

    # bf16 compute path (v6e/v7x MXU-friendly); loose tolerance check.
    q_bf16 = jax.block_until_ready(
        mlp_q_forward(obs2, params, compute_dtype=jnp.bfloat16))
    assert q_bf16.shape == (batch2, act_dim), q_bf16.shape
    assert float(jnp.max(jnp.abs(q_bf16 - q2_ref))) < 1e-1, "bf16 path diverged"

    print("KERNEL_OK")
</pallas_src>

<mosaic_0001>
module attributes {stable_mosaic.version = 11 : i64} {
  func.func @_mlp_q_kernel(%arg0: i32, %arg1: memref<16x128xf32, #tpu.memory_space<vmem>>, %arg2: memref<32x16xf32, #tpu.memory_space<vmem>>, %arg3: memref<32x1xf32, #tpu.memory_space<vmem>>, %arg4: memref<32x32xf32, #tpu.memory_space<vmem>>, %arg5: memref<32x1xf32, #tpu.memory_space<vmem>>, %arg6: memref<4x32xf32, #tpu.memory_space<vmem>>, %arg7: memref<4x1xf32, #tpu.memory_space<vmem>>, %arg8: memref<4x128xf32, #tpu.memory_space<vmem>>) attributes {dimension_semantics = [#tpu.dimension_semantics<parallel>], iteration_bounds = array<i64: 1>, scalar_prefetch = 0 : i64, scratch_operands = 0 : i64, tpu.core_type = #tpu.core_type<tc>, window_params = [{transform_indices = @transform_0, window_bounds = array<i64: 16, 128>}, {pipeline_mode = #tpu.pipeline_mode<synchronous>, transform_indices = @transform_1, window_bounds = array<i64: 32, 16>}, {pipeline_mode = #tpu.pipeline_mode<synchronous>, transform_indices = @transform_2, window_bounds = array<i64: 32, 1>}, {pipeline_mode = #tpu.pipeline_mode<synchronous>, transform_indices = @transform_3, window_bounds = array<i64: 32, 32>}, {pipeline_mode = #tpu.pipeline_mode<synchronous>, transform_indices = @transform_4, window_bounds = array<i64: 32, 1>}, {pipeline_mode = #tpu.pipeline_mode<synchronous>, transform_indices = @transform_5, window_bounds = array<i64: 4, 32>}, {pipeline_mode = #tpu.pipeline_mode<synchronous>, transform_indices = @transform_6, window_bounds = array<i64: 4, 1>}, {transform_indices = @transform_7, window_bounds = array<i64: 4, 128>}]} {
    %c0 = arith.constant 0 : index
    %c0_0 = arith.constant 0 : index
    %0 = vector.load %arg2[%c0, %c0_0] : memref<32x16xf32, #tpu.memory_space<vmem>>, vector<32x16xf32>
    %c0_1 = arith.constant 0 : index
    %c0_2 = arith.constant 0 : index
    %1 = vector.load %arg1[%c0_1, %c0_2] : memref<16x128xf32, #tpu.memory_space<vmem>>, vector<16x128xf32>
    %cst = arith.constant dense<0.000000e+00> : vector<32x128xf32>
    %2 = tpu.matmul %0, %1, %cst {dimension_numbers = #tpu.dot_dimension_numbers<[1], [0], [0], [1], [0, 0, 1, 1], [], []>} : vector<32x16xf32>, vector<16x128xf32>, vector<32x128xf32> -> vector<32x128xf32>
    %c0_3 = arith.constant 0 : index
    %c0_4 = arith.constant 0 : index
    %3 = vector.load %arg3[%c0_3, %c0_4] : memref<32x1xf32, #tpu.memory_space<vmem>>, vector<32x1xf32>
    %4 = vector.broadcast %3 : vector<32x1xf32> to vector<32x128xf32>
    %5 = arith.addf %2, %4 : vector<32x128xf32>
    %cst_5 = arith.constant 0.000000e+00 : f32
    %6 = vector.broadcast %cst_5 : f32 to vector<32x128xf32>
    %7 = arith.maximumf %5, %6 : vector<32x128xf32>
    %c0_6 = arith.constant 0 : index
    %c0_7 = arith.constant 0 : index
    %8 = vector.load %arg4[%c0_6, %c0_7] : memref<32x32xf32, #tpu.memory_space<vmem>>, vector<32x32xf32>
    %cst_8 = arith.constant dense<0.000000e+00> : vector<32x128xf32>
    %9 = tpu.matmul %8, %7, %cst_8 {dimension_numbers = #tpu.dot_dimension_numbers<[1], [0], [0], [1], [0, 0, 1, 1], [], []>} : vector<32x32xf32>, vector<32x128xf32>, vector<32x128xf32> -> vector<32x128xf32>
    %c0_9 = arith.constant 0 : index
    %c0_10 = arith.constant 0 : index
    %10 = vector.load %arg5[%c0_9, %c0_10] : memref<32x1xf32, #tpu.memory_space<vmem>>, vector<32x1xf32>
    %11 = vector.broadcast %10 : vector<32x1xf32> to vector<32x128xf32>
    %12 = arith.addf %9, %11 : vector<32x128xf32>
    %cst_11 = arith.constant 0.000000e+00 : f32
    %13 = vector.broadcast %cst_11 : f32 to vector<32x128xf32>
    %14 = arith.maximumf %12, %13 : vector<32x128xf32>
    %c0_12 = arith.constant 0 : index
    %c0_13 = arith.constant 0 : index
    %15 = vector.load %arg6[%c0_12, %c0_13] : memref<4x32xf32, #tpu.memory_space<vmem>>, vector<4x32xf32>
    %cst_14 = arith.constant dense<0.000000e+00> : vector<4x128xf32>
    %16 = tpu.matmul %15, %14, %cst_14 {dimension_numbers = #tpu.dot_dimension_numbers<[1], [0], [0], [1], [0, 0, 1, 1], [], []>} : vector<4x32xf32>, vector<32x128xf32>, vector<4x128xf32> -> vector<4x128xf32>
    %c0_15 = arith.constant 0 : index
    %c0_16 = arith.constant 0 : index
    %17 = vector.load %arg7[%c0_15, %c0_16] : memref<4x1xf32, #tpu.memory_space<vmem>>, vector<4x1xf32>
    %18 = vector.broadcast %17 : vector<4x1xf32> to vector<4x128xf32>
    %19 = arith.addf %16, %18 : vector<4x128xf32>
    %c0_17 = arith.constant 0 : index
    %c0_18 = arith.constant 0 : index
    %20 = vector.load %arg8[%c0_17, %c0_18] : memref<4x128xf32, #tpu.memory_space<vmem>>, vector<4x128xf32>
    tpu.vector_store %arg8[%c0_17, %c0_18], %19 {strides = array<i32>} : memref<4x128xf32, #tpu.memory_space<vmem>>, vector<4x128xf32>,
    return
  }
  func.func @transform_0(%arg0: i32) -> (i32, i32) {
    %c0_i32 = arith.constant 0 : i32
    %c0_i32_0 = arith.constant 0 : i32
    return %c0_i32, %arg0 : i32, i32
  }
  func.func @transform_1(%arg0: i32) -> (i32, i32) {
    %c0_i32 = arith.constant 0 : i32
    %c0_i32_0 = arith.constant 0 : i32
    %c0_i32_1 = arith.constant 0 : i32
    return %c0_i32, %c0_i32_0 : i32, i32
  }
  func.func @transform_2(%arg0: i32) -> (i32, i32) {
    %c0_i32 = arith.constant 0 : i32
    %c0_i32_0 = arith.constant 0 : i32
    %c0_i32_1 = arith.constant 0 : i32
    return %c0_i32, %c0_i32_0 : i32, i32
  }
  func.func @transform_3(%arg0: i32) -> (i32, i32) {
    %c0_i32 = arith.constant 0 : i32
    %c0_i32_0 = arith.constant 0 : i32
    %c0_i32_1 = arith.constant 0 : i32
    return %c0_i32, %c0_i32_0 : i32, i32
  }
  func.func @transform_4(%arg0: i32) -> (i32, i32) {
    %c0_i32 = arith.constant 0 : i32
    %c0_i32_0 = arith.constant 0 : i32
    %c0_i32_1 = arith.constant 0 : i32
    return %c0_i32, %c0_i32_0 : i32, i32
  }
  func.func @transform_5(%arg0: i32) -> (i32, i32) {
    %c0_i32 = arith.constant 0 : i32
    %c0_i32_0 = arith.constant 0 : i32
    %c0_i32_1 = arith.constant 0 : i32
    return %c0_i32, %c0_i32_0 : i32, i32
  }
  func.func @transform_6(%arg0: i32) -> (i32, i32) {
    %c0_i32 = arith.constant 0 : i32
    %c0_i32_0 = arith.constant 0 : i32
    %c0_i32_1 = arith.constant 0 : i32
    return %c0_i32, %c0_i32_0 : i32, i32
  }
  func.func @transform_7(%arg0: i32) -> (i32, i32) {
    %c0_i32 = arith.constant 0 : i32
    %c0_i32_0 = arith.constant 0 : i32
    return %c0_i32, %arg0 : i32, i32
  }
}

</mosaic_0001>

<bundles_post_ra>
// kernel: mlp_q_forward.1
= control target key start
LH: loop header
LB: loop body
LE: loop exit
PB: predicated region body
PF: predicated region fallthrough
CT: control target
= control target key end

     0   :  { %vm56_vm0 = vcmask 130048   ;;  %v460_v3 = vmov 0   ;;  %vm186_vm1 = vcmask 261120   ;;  %v461_v39 = vmov 0.0|0.0   ;;  %s576_s0 = inlined_call_operand.vmem [shape: f32[16,128], index: 0, kind: input, shape index: {}]   ;;  %s577_s1 = inlined_call_operand.vmem [shape: f32[32,16], index: 1, kind: input, shape index: {}]   ;;  %s578_s2 = inlined_call_operand.vmem [shape: f32[32,1], index: 2, kind: input, shape index: {}]   ;;  %s579_s4 = inlined_call_operand.vmem [shape: f32[32,1], index: 4, kind: input, shape index: {}]   ;;  %s580_s6 = inlined_call_operand.vmem [shape: f32[4,1], index: 6, kind: input, shape index: {}]   ;;  %s581_s3 = inlined_call_operand.vmem [shape: f32[32,32], index: 3, kind: input, shape index: {}]   ;;  %s582_s5 = inlined_call_operand.vmem [shape: f32[4,32], index: 5, kind: input, shape index: {}]   ;;  %s583_s7 = inlined_call_operand.vmem [shape: f32[4,128], index: 7, kind: output, shape index: {}]  }
   0x1   :  { %v30_v0 = vld [vmem:[%s576_s0] sm:$0xff]  ;;  %v31_v1 = vld [vmem:[%s576_s0 + $0x8] sm:$0xff]  ;;  %458 = vset.pattern.permute.xlu0 %v460_v3  ;;  %459 = vset.pattern.permute.xlu1 %v460_v3  ;;  %v34_v6 = vld [vmem:[%s578_s2 + $0x10] sm:$0xff]  ;;  %vm462_vm2 = vmmov 0   ;;  %v463_v40 = vmov 0.0  }
   0x2   :  { %v26_v2 = vld [vmem:[%s577_s1] sm:$0xff]  ;;  %v436_v4 = vpack.c.bf16 %v31_v1, %v30_v0  ;;  %v27_v7 = vld [vmem:[%s577_s1 + $0x8] sm:$0xff]  ;;  %48 = vperm.xlu1 %459, %v34_v6   ;;  %v28_v9 = vld [vmem:[%s577_s1 + $0x10] sm:$0xff] }
   0x3   :  { %405 = vmatprep.mubr.msk.f32.mxu0 %vm56_vm0, %v26_v2  ;;  %v32_v5 = vld [vmem:[%s578_s2] sm:$0xff]  ;;  %v33_v8 = vld [vmem:[%s578_s2 + $0x8] sm:$0xff]  ;;  %v35_v10 = vld [vmem:[%s578_s2 + $0x18] sm:$0xff] }
   0x4   :  { %437 = vmatprep.subr.bf16.mxu0 %v436_v4  ;;  %38 = vperm.xlu0 %458, %v32_v5   ;;  %v29_v11 = vld [vmem:[%s577_s1 + $0x18] sm:$0xff]  ;;  %v162_v12 = vld [vmem:[%s579_s4] sm:$0xff]  ;;  %v163_v13 = vld [vmem:[%s579_s4 + $0x8] sm:$0xff] }
   0x5   :  { %439 = vmatpush3.bf16.msra.mxu0 %v436_v4  ;;  %v164_v14 = vld [vmem:[%s579_s4 + $0x10] sm:$0xff]  ;;  %v165_v15 = vld [vmem:[%s579_s4 + $0x18] sm:$0xff]  ;;  %v289_v16 = vld [vmem:[%s580_s6] sm:$0xf] }
   0x6   :  { %53 = vperm.xlu1 %459, %v35_v10   ;;  %v158_v17 = vld [vmem:[%s581_s3] sm:$0xff]  ;;  %v159_v36 = vld [vmem:[%s581_s3 + $0x8] sm:$0xff]  ;;  %v160_v37 = vld [vmem:[%s581_s3 + $0x10] sm:$0xff]  ;;  %448 = vmatprep.subr.bf16.mxu0 %v461_v39 }
   0x7   :  { %419 = vmatprep.mubr.msk.f32.mxu1 %vm186_vm1, %v158_v17  ;;  %v161_v38 = vld [vmem:[%s581_s3 + $0x18] sm:$0xff]  ;;  %v288_v59 = vld [vmem:[%s582_s5] sm:$0xf] }
   0x8   :  { %406 = vmatmul.mubr.msk.f32.vlgmr.msra.gmra.mrb[0].mxu0 %vm56_vm0, %v27_v7  ;;  %43 = vperm.xlu0 %458, %v33_v8  }
   0x9   :  { %408 = vmatprep.mubr.msk.f32.mxu0 %vm56_vm0, %v28_v9 }
   0xa   :  { %173 = vperm.xlu1 %459, %v163_v13  }
   0xc   :  { %409 = vmatmul.mubr.msk.f32.gmra.mrb[2].mxu0 %vm56_vm0, %v29_v11  ;;  %168 = vperm.xlu0 %458, %v162_v12  }
   0xd   :  { %433 = vmatprep.mubr.msk.f32.mxu0 %vm462_vm2, %v463_v40 }
   0xe   :  { %183 = vperm.xlu1 %459, %v165_v15  }
  0x10   :  { %178 = vperm.xlu0 %458, %v164_v14  }
  0x14   :  { %292 = vperm.xlu0 %458, %v289_v16  }
  0x81   :  { %v49_v19 = vpop.permute.xlu1 %48 }
  0x83   :  { %v39_v18 = vpop.permute.xlu0 %38 }
  0x85   :  { %v54_v26 = vpop.permute.xlu1 %53 }
  0x87   :  { %v44_v20 = vpop.permute.xlu0 %43 }
  0x89   :  { %v174_v41 = vpop.permute.xlu1 %173 }
  0x8b   :  { %v169_v42 = vpop.permute.xlu0 %168 }
  0x8d   :  { %v184_v48 = vpop.permute.xlu1 %183 }
  0x8f   :  { %v179_v51 = vpop.permute.xlu0 %178 }
  0x93   :  { %v293_v60 = vpop.permute.xlu0 %292 }
  0xdb   :  { %v407_v21 = vpop.f32.mrb[0].mxu0 }
  0xdc   :  { %v141_v22 = vadd.f32 %v407_v21, %v44_v20  ;;  %v135_v23 = vpop.f32.mrb[1].mxu0 }
  0xdd   :  { %v136_v24 = vadd.f32 %v135_v23, %v39_v18 }
  0xde   :  { %v155_v25 = vmax.f32 %v141_v22, 0.0 }
  0xdf   :  { %v154_v27 = vmax.f32 %v136_v24, 0.0  ;;  %v410_v28 = vpop.f32.mrb[2].mxu0 }
  0xe0   :  { %v151_v29 = vadd.f32 %v410_v28, %v54_v26  ;;  %v145_v30 = vpop.f32.mrb[3].mxu0 }
  0xe1   :  { %v146_v31 = vadd.f32 %v145_v30, %v49_v19  ;;  %v440_v32 = vpack.c.bf16 %v155_v25, %v154_v27 }
  0xe2   :  { %v157_v33 = vmax.f32 %v151_v29, 0.0 }
  0xe3   :  { %v156_v34 = vmax.f32 %v146_v31, 0.0  ;;  %441 = vmatprep.subr.bf16.mxu1 %v440_v32 }
  0xe4   :  { %443 = vmatpush3.bf16.msra.mxu1 %v440_v32 }
  0xe5   :  { %v444_v35 = vpack.c.bf16 %v157_v33, %v156_v34 }
  0xe7   :  { %445 = vmatprep.subr.bf16.mxu1 %v444_v35 }
  0xe8   :  { %447 = vmatpush3.bf16.msra.mxu1 %v444_v35 }
  0xeb   :  { %420 = vmatmul.mubr.msk.f32.vlgmr.msra.gmra.mrb[0].mxu1 %vm186_vm1, %v159_v36 }
  0xec   :  { %422 = vmatprep.mubr.msk.f32.mxu1 %vm186_vm1, %v160_v37 }
  0xef   :  { %423 = vmatmul.mubr.msk.f32.gmra.mrb[2].mxu1 %vm186_vm1, %v161_v38 }
 0x1be   :  { %v421_v43 = vpop.f32.mrb[0].mxu1 }
 0x1bf   :  { %v271_v44 = vadd.f32 %v421_v43, %v174_v41  ;;  %v265_v45 = vpop.f32.mrb[1].mxu1 }
 0x1c0   :  { %v266_v46 = vadd.f32 %v265_v45, %v169_v42 }
 0x1c1   :  { %v285_v47 = vmax.f32 %v271_v44, 0.0 }
 0x1c2   :  { %v284_v49 = vmax.f32 %v266_v46, 0.0  ;;  %v424_v50 = vpop.f32.mrb[2].mxu1 }
 0x1c3   :  { %v281_v52 = vadd.f32 %v424_v50, %v184_v48  ;;  %v275_v53 = vpop.f32.mrb[3].mxu1 }
 0x1c4   :  { %v449_v54 = vpack.c.bf16 %v285_v47, %v284_v49  ;;  %v276_v55 = vadd.f32 %v275_v53, %v179_v51 }
 0x1c5   :  { %v287_v56 = vmax.f32 %v281_v52, 0.0 }
 0x1c6   :  { %v286_v57 = vmax.f32 %v276_v55, 0.0  ;;  %450 = vmatpush3.bf16.msra.mxu0 %v449_v54 }
 0x1c7   :  { %451 = vmatprep.subr.bf16.mxu0 %v461_v39 }
 0x1c8   :  { %v452_v58 = vpack.c.bf16 %v287_v56, %v286_v57 }
 0x1ca   :  { %453 = vmatpush3.bf16.msra.mxu0 %v452_v58 }
 0x1cd   :  { %434 = vmatmul.mubr.msk.f32.vlgmr.msra.gmra.mrb[4].mxu0 %vm186_vm1, %v288_v59 }
 0x2a0   :  { %v364_v61 = vpop.f32.mrb[4].mxu0 }
 0x2a1   :  { %v365_v62 = vadd.f32 %v364_v61, %v293_v60  ;;  %v435_v63 = vpop.f32.mrb[5].mxu0 }
 0x2a3   :  { %368 = vst [vmem:[%s583_s7] sm:$0xf] %v365_v62 }

</bundles_post_ra>
